<compile_context>
chip_gen: v5e
topology: v5e:2x2
jax: 0.10.0
libtpu: 0.0.40
codegen_flags: <defaults>
</compile_context>

<pallas_src>
import jax
import jax.numpy as jnp
from jax.experimental import pallas as pl
from jax.experimental.pallas import tpu as pltpu


def _qnet_kernel(x_ref, w1_ref, b1_ref, w2_ref, b2_ref, o_ref):
    # fc1: (TB, S) @ (S, H) + (1, H) -> relu
    h = jnp.dot(x_ref[...], w1_ref[...], preferred_element_type=jnp.float32)
    h = jnp.maximum(h + b1_ref[...], 0.0)
    # fc2: (TB, H) @ (H, A) + (1, A)
    out = jnp.dot(h, w2_ref[...], preferred_element_type=jnp.float32)
    out = out + b2_ref[...]
    o_ref[...] = out.astype(o_ref.dtype)


def qnetwork_forward(x, w1, b1, w2, b2, *, tb=256):
    """Pallas forward pass of QNetwork.

    x : (B, state_size) float32
    w1: (state_size, 24) float32, b1: (1, 24) float32
    w2: (24, action_size) float32, b2: (1, action_size) float32
    returns (B, action_size) float32
    """
    B, S = x.shape
    H = w1.shape[1]
    A = w2.shape[1]

    # Batch tile: multiple of 8 (sublane granularity), capped at `tb`.
    tb_eff = min(tb, max(8, ((B + 7) // 8) * 8))
    b_pad = ((B + tb_eff - 1) // tb_eff) * tb_eff
    if b_pad != B:
        x = jnp.pad(x, ((0, b_pad - B), (0, 0)))

    grid = (b_pad // tb_eff,)

    # Feature dims (S, H, A) are taken full-extent, so they are exempt from
    # the (8, 128) block-divisibility constraint. Weight/bias index_maps
    # always return block (0, 0) => resident in VMEM across the batch grid.
    out = pl.pallas_call(
        _qnet_kernel,
        out_shape=jax.ShapeDtypeStruct((b_pad, A), jnp.float32),
        grid=grid,
        in_specs=[
            pl.BlockSpec((tb_eff, S), lambda i: (i, 0)),   # x: streamed per step
            pl.BlockSpec((S, H), lambda i: (0, 0)),        # w1: resident
            pl.BlockSpec((1, H), lambda i: (0, 0)),        # b1: resident
            pl.BlockSpec((H, A), lambda i: (0, 0)),        # w2: resident
            pl.BlockSpec((1, A), lambda i: (0, 0)),        # b2: resident
        ],
        out_specs=pl.BlockSpec((tb_eff, A), lambda i: (i, 0)),
        compiler_params=pltpu.CompilerParams(
            dimension_semantics=("parallel",),  # v7x: shard batch across 2 TCs
        ),
    )(x, w1, b1, w2, b2)

    return out[:B]


def _reference_forward(x, w1, b1, w2, b2):
    h = jnp.maximum(x @ w1 + b1, 0.0)
    return h @ w2 + b2


if __name__ == "__main__":
    # Shapes implied by the module: state_size=4, hidden=24 (fixed), and a
    # small action_size=2. Batch chosen small and non-multiple of 8 so the
    # padding path is also exercised.
    batch, state_size, hidden, action_size = 37, 4, 24, 2

    key = jax.random.PRNGKey(0)
    kx, k1, k2, k3, k4 = jax.random.split(key, 5)

    # Deterministic parameter init (uniform +-1/sqrt(fan_in), like torch Linear).
    bound1 = 1.0 / (state_size ** 0.5)
    bound2 = 1.0 / (hidden ** 0.5)
    x = jax.random.normal(kx, (batch, state_size), dtype=jnp.float32)
    w1 = jax.random.uniform(k1, (state_size, hidden), jnp.float32, -bound1, bound1)
    b1 = jax.random.uniform(k2, (1, hidden), jnp.float32, -bound1, bound1)
    w2 = jax.random.uniform(k3, (hidden, action_size), jnp.float32, -bound2, bound2)
    b2 = jax.random.uniform(k4, (1, action_size), jnp.float32, -bound2, bound2)

    out = qnetwork_forward(x, w1, b1, w2, b2)
    out = jax.block_until_ready(out)

    ref = _reference_forward(x, w1, b1, w2, b2)
    assert out.shape == (batch, action_size)
    assert jnp.allclose(out, ref, atol=1e-5, rtol=1e-5)

    print("KERNEL_OK")
</pallas_src>

<mosaic_0001>
module attributes {stable_mosaic.version = 11 : i64} {
  func.func @_qnet_kernel(%arg0: i32, %arg1: memref<40x4xf32, #tpu.memory_space<vmem>>, %arg2: memref<4x24xf32, #tpu.memory_space<vmem>>, %arg3: memref<1x24xf32, #tpu.memory_space<vmem>>, %arg4: memref<24x2xf32, #tpu.memory_space<vmem>>, %arg5: memref<1x2xf32, #tpu.memory_space<vmem>>, %arg6: memref<40x2xf32, #tpu.memory_space<vmem>>) attributes {dimension_semantics = [#tpu.dimension_semantics<parallel>], iteration_bounds = array<i64: 1>, scalar_prefetch = 0 : i64, scratch_operands = 0 : i64, tpu.core_type = #tpu.core_type<tc>, window_params = [{transform_indices = @transform_0, window_bounds = array<i64: 40, 4>}, {pipeline_mode = #tpu.pipeline_mode<synchronous>, transform_indices = @transform_1, window_bounds = array<i64: 4, 24>}, {pipeline_mode = #tpu.pipeline_mode<synchronous>, transform_indices = @transform_2, window_bounds = array<i64: 1, 24>}, {pipeline_mode = #tpu.pipeline_mode<synchronous>, transform_indices = @transform_3, window_bounds = array<i64: 24, 2>}, {pipeline_mode = #tpu.pipeline_mode<synchronous>, transform_indices = @transform_4, window_bounds = array<i64: 1, 2>}, {transform_indices = @transform_5, window_bounds = array<i64: 40, 2>}]} {
    %c0 = arith.constant 0 : index
    %c0_0 = arith.constant 0 : index
    %0 = vector.load %arg1[%c0, %c0_0] : memref<40x4xf32, #tpu.memory_space<vmem>>, vector<40x4xf32>
    %c0_1 = arith.constant 0 : index
    %c0_2 = arith.constant 0 : index
    %1 = vector.load %arg2[%c0_1, %c0_2] : memref<4x24xf32, #tpu.memory_space<vmem>>, vector<4x24xf32>
    %cst = arith.constant dense<0.000000e+00> : vector<40x24xf32>
    %2 = tpu.matmul %0, %1, %cst {dimension_numbers = #tpu.dot_dimension_numbers<[1], [0], [0], [1], [0, 0, 1, 1], [], []>} : vector<40x4xf32>, vector<4x24xf32>, vector<40x24xf32> -> vector<40x24xf32>
    %c0_3 = arith.constant 0 : index
    %c0_4 = arith.constant 0 : index
    %3 = vector.load %arg3[%c0_3, %c0_4] : memref<1x24xf32, #tpu.memory_space<vmem>>, vector<1x24xf32>
    %4 = vector.broadcast %3 : vector<1x24xf32> to vector<40x24xf32>
    %5 = arith.addf %2, %4 : vector<40x24xf32>
    %cst_5 = arith.constant 0.000000e+00 : f32
    %6 = vector.broadcast %cst_5 : f32 to vector<40x24xf32>
    %7 = arith.maximumf %5, %6 : vector<40x24xf32>
    %c0_6 = arith.constant 0 : index
    %c0_7 = arith.constant 0 : index
    %8 = vector.load %arg4[%c0_6, %c0_7] : memref<24x2xf32, #tpu.memory_space<vmem>>, vector<24x2xf32>
    %cst_8 = arith.constant dense<0.000000e+00> : vector<40x2xf32>
    %9 = tpu.matmul %7, %8, %cst_8 {dimension_numbers = #tpu.dot_dimension_numbers<[1], [0], [0], [1], [0, 0, 1, 1], [], []>} : vector<40x24xf32>, vector<24x2xf32>, vector<40x2xf32> -> vector<40x2xf32>
    %c0_9 = arith.constant 0 : index
    %c0_10 = arith.constant 0 : index
    %10 = vector.load %arg5[%c0_9, %c0_10] : memref<1x2xf32, #tpu.memory_space<vmem>>, vector<1x2xf32>
    %11 = vector.broadcast %10 : vector<1x2xf32> to vector<40x2xf32>
    %12 = arith.addf %9, %11 : vector<40x2xf32>
    %c0_11 = arith.constant 0 : index
    %c0_12 = arith.constant 0 : index
    %13 = vector.load %arg6[%c0_11, %c0_12] : memref<40x2xf32, #tpu.memory_space<vmem>>, vector<40x2xf32>
    tpu.vector_store %arg6[%c0_11, %c0_12], %12 {strides = array<i32>} : memref<40x2xf32, #tpu.memory_space<vmem>>, vector<40x2xf32>,
    return
  }
  func.func @transform_0(%arg0: i32) -> (i32, i32) {
    %c0_i32 = arith.constant 0 : i32
    %c0_i32_0 = arith.constant 0 : i32
    return %arg0, %c0_i32 : i32, i32
  }
  func.func @transform_1(%arg0: i32) -> (i32, i32) {
    %c0_i32 = arith.constant 0 : i32
    %c0_i32_0 = arith.constant 0 : i32
    %c0_i32_1 = arith.constant 0 : i32
    return %c0_i32, %c0_i32_0 : i32, i32
  }
  func.func @transform_2(%arg0: i32) -> (i32, i32) {
    %c0_i32 = arith.constant 0 : i32
    %c0_i32_0 = arith.constant 0 : i32
    %c0_i32_1 = arith.constant 0 : i32
    return %c0_i32, %c0_i32_0 : i32, i32
  }
  func.func @transform_3(%arg0: i32) -> (i32, i32) {
    %c0_i32 = arith.constant 0 : i32
    %c0_i32_0 = arith.constant 0 : i32
    %c0_i32_1 = arith.constant 0 : i32
    return %c0_i32, %c0_i32_0 : i32, i32
  }
  func.func @transform_4(%arg0: i32) -> (i32, i32) {
    %c0_i32 = arith.constant 0 : i32
    %c0_i32_0 = arith.constant 0 : i32
    %c0_i32_1 = arith.constant 0 : i32
    return %c0_i32, %c0_i32_0 : i32, i32
  }
  func.func @transform_5(%arg0: i32) -> (i32, i32) {
    %c0_i32 = arith.constant 0 : i32
    %c0_i32_0 = arith.constant 0 : i32
    return %arg0, %c0_i32 : i32, i32
  }
}

</mosaic_0001>

<bundles_post_ra>
// kernel: tpu_custom_call.1
= control target key start
LH: loop header
LB: loop body
LE: loop exit
PB: predicated region body
PF: predicated region fallthrough
CT: control target
= control target key end

     0   :  { %vm46_vm0 = vcmask 1043456   ;;  %vm30_vm1 = vcmask 31744   ;;  %vm94_vm2 = vcmask 195584   ;;  %vm142_vm3 = vcmask 15360   ;;  %s252_s1 = inlined_call_operand.vmem [shape: f32[4,24], index: 1, kind: input, shape index: {}]   ;;  %s253_s0 = inlined_call_operand.vmem [shape: f32[40,4], index: 0, kind: input, shape index: {}]   ;;  %s254_s2 = inlined_call_operand.vmem [shape: f32[1,24], index: 2, kind: input, shape index: {}]   ;;  %s255_s4 = inlined_call_operand.vmem [shape: f32[1,2], index: 4, kind: input, shape index: {}]   ;;  %s256_s3 = inlined_call_operand.vmem [shape: f32[24,2], index: 3, kind: input, shape index: {}]   ;;  %s257_s5 = inlined_call_operand.vmem [shape: f32[40,2], index: 5, kind: output, shape index: {}]  }
   0x1   :  { %v25_v0 = vld [vmem:[%s252_s1] sm:$0xf]  ;;  %v23_v1 = vld [vmem:[%s253_s0 + $0x18] sm:$0xff]  ;;  %v21_v4 = vld [vmem:[%s253_s0 + $0x8] sm:$0xff] }
   0x2   :  { %v20_v2 = vld [vmem:[%s253_s0] sm:$0xff]  ;;  %163 = vmatpush.msk.msra.mxu3 %vm46_vm0, %v25_v0  ;;  %152 = vmatpush.msk.msra.mxu0 %vm46_vm0, %v25_v0  ;;  %v22_v5 = vld [vmem:[%s253_s0 + $0x10] sm:$0xff]  ;;  %v88_v7 = vld [vmem:[%s256_s3 + $0x8] sm:$0xff] }
   0x3   :  { %156 = vmatmul.msk.f32.vlgmr.msra.gmra.mxu3 %vm30_vm1, %v23_v1  ;;  %153 = vmatmul.msk.f32.vlgmr.msra.gmra.mxu0 %vm30_vm1, %v20_v2  ;;  %v24_v3 = vld [vmem:[%s253_s0 + $0x20] sm:$0xff]  ;;  %v89_v6 = vld [vmem:[%s256_s3 + $0x10] sm:$0xff] }
   0x4   :  { %123 = vmatpush.msra.mxu1 %v89_v6  ;;  %164 = vmatpush.msra.mxu2 %v89_v6  ;;  %v87_v8 = vld [vmem:[%s256_s3] sm:$0xff] }
   0x5   :  { %v167_v9 = vld [vmem:[%s254_s2] ss:$0 sm:$0xff] }
   0x6   :  { %124 = vmatpush.msra.mxu1 %v88_v7  ;;  %165 = vmatpush.msra.mxu2 %v88_v7  ;;  %v168_v25 = vld [vmem:[%s255_s4] ss:$0 sm:$0xff] }
   0x8   :  { %125 = vmatpush.msra.mxu1 %v87_v8  ;;  %166 = vmatpush.msra.mxu2 %v87_v8 }
   0xb   :  { %157 = vmatmul.msk.f32.gmra.mxu3 %vm30_vm1, %v24_v3  ;;  %154 = vmatmul.msk.f32.gmra.mxu0 %vm30_vm1, %v21_v4 }
  0x13   :  { %155 = vmatmul.msk.f32.gmra.mxu0 %vm30_vm1, %v22_v5 }
  0x80   :  { %v67_v10 = vpop.f32.mrf.mxu0 }
  0x81   :  { %v68_v11 = vadd.f32 %v167_v9, %v67_v10 }
  0x83   :  { %v82_v12 = vmax.f32 %v68_v11, 0.0 }
  0x85   :  { %158 = vmatmul.msk.f32.vlgmr.msra.gmra.mxu1 %vm94_vm2, %v82_v12 }
  0x86   :  { %v76_v13 = vpop.f32.mrf.mxu3 }
  0x87   :  { %v77_v14 = vadd.f32 %v167_v9, %v76_v13 }
  0x88   :  { %v70_v15 = vpop.f32.mrf.mxu0 }
  0x89   :  { %v85_v16 = vmax.f32 %v77_v14, 0.0  ;;  %v71_v17 = vadd.f32 %v167_v9, %v70_v15 }
  0x8b   :  { %161 = vmatmul.msk.f32.vlgmr.msra.gmra.mxu2 %vm94_vm2, %v85_v16  ;;  %v83_v18 = vmax.f32 %v71_v17, 0.0 }
  0x8d   :  { %159 = vmatmul.msk.f32.gmra.mxu1 %vm94_vm2, %v83_v18 }
  0x8e   :  { %v79_v19 = vpop.f32.mrf.mxu3 }
  0x8f   :  { %v80_v20 = vadd.f32 %v167_v9, %v79_v19 }
  0x90   :  { %v73_v21 = vpop.f32.mrf.mxu0 }
  0x91   :  { %v86_v22 = vmax.f32 %v80_v20, 0.0  ;;  %v74_v23 = vadd.f32 %v167_v9, %v73_v21 }
  0x93   :  { %162 = vmatmul.msk.f32.gmra.mxu2 %vm94_vm2, %v86_v22  ;;  %v84_v24 = vmax.f32 %v74_v23, 0.0 }
  0x95   :  { %160 = vmatmul.msk.f32.gmra.mxu1 %vm94_vm2, %v84_v24 }
 0x102   :  { %v127_v26 = vpop.f32.mrf.mxu1 }
 0x103   :  { %v128_v27 = vadd.f32 %v168_v25, %v127_v26 }
 0x105   :  { %143 = vst.msk [vmem:[%s257_s5] sm:$0xff] %vm142_vm3, %v128_v27 }
 0x10a   :  { %v130_v28 = vpop.f32.mrf.mxu1 }
 0x10b   :  { %v131_v29 = vadd.f32 %v168_v25, %v130_v28 }
 0x10d   :  { %144 = vst.msk [vmem:[%s257_s5 + $0x8] sm:$0xff] %vm142_vm3, %v131_v29 }
 0x10e   :  { %v136_v30 = vpop.f32.mrf.mxu2 }
 0x10f   :  { %v137_v31 = vadd.f32 %v168_v25, %v136_v30 }
 0x111   :  { %146 = vst.msk [vmem:[%s257_s5 + $0x18] sm:$0xff] %vm142_vm3, %v137_v31 }
 0x112   :  { %v133_v32 = vpop.f32.mrf.mxu1 }
 0x113   :  { %v134_v33 = vadd.f32 %v168_v25, %v133_v32 }
 0x115   :  { %145 = vst.msk [vmem:[%s257_s5 + $0x10] sm:$0xff] %vm142_vm3, %v134_v33 }
 0x116   :  { %v139_v34 = vpop.f32.mrf.mxu2 }
 0x117   :  { %v140_v35 = vadd.f32 %v168_v25, %v139_v34 }
 0x119   :  { %147 = vst.msk [vmem:[%s257_s5 + $0x20] sm:$0xff] %vm142_vm3, %v140_v35 }

</bundles_post_ra>
